<compile_context>
chip_gen: v5e
topology: v5e:2x2
jax: 0.10.0
libtpu: 0.0.40
codegen_flags: <defaults>
</compile_context>

<pallas_src>
import functools

import jax
import jax.numpy as jnp
from jax.experimental import pallas as pl
from jax.experimental.pallas import tpu as pltpu


def _mve_kernel(alpha_ref, x_ref, o_ref, acc_ref, *, inv_hw):
    # Grid: (row_tile_idx, spatial_tile_idx); spatial axis is the reduction.
    s = pl.program_id(1)

    @pl.when(s == 0)
    def _():
        acc_ref[...] = jnp.zeros_like(acc_ref)

    # Partial spatial sum for this lane tile: (row_tile, lane_tile) -> (row_tile, 1)
    acc_ref[...] += jnp.sum(x_ref[...], axis=1, keepdims=True)

    @pl.when(s == pl.num_programs(1) - 1)
    def _():
        o_ref[...] = (alpha_ref[...] * acc_ref[...] * inv_hw).astype(o_ref.dtype)


def _round_up(x, m):
    return ((x + m - 1) // m) * m


def _choose_lane_tile(hw, max_lane_tile, min_lane_tile=1024):
    """Multiple-of-128 lane tile. Prefers zero padding; otherwise minimizes it."""
    hw_r = _round_up(hw, 128)
    if hw_r <= max_lane_tile:
        return hw_r  # one lane tile, <128 elements of padding at most
    best_t = max_lane_tile
    best_waste = _round_up(hw, best_t) - hw
    t = max_lane_tile
    while t >= min_lane_tile:
        waste = _round_up(hw, t) - hw
        if waste < best_waste:
            best_t, best_waste = t, waste
        if waste == 0:
            break  # scanning downward: first exact divisor is the largest
        t -= 128
    return best_t


def _choose_row_tile(rows, max_row_tile):
    """Multiple-of-8 row tile dividing rows when possible; >=2 tiles when possible."""
    if rows % 8 == 0:
        cap = min(max_row_tile, rows)
        half_cap = max(8, min(cap, (rows // 2) // 8 * 8))
        for t in range(half_cap, 7, -8):   # prefer >= 2 blocks (v7x megacore)
            if rows % t == 0:
                return t
        for t in range(cap, 7, -8):
            if rows % t == 0:
                return t
        return 8
    if rows <= max_row_tile:
        return rows  # full-extent second-minor block is always legal
    return max_row_tile  # rare: padding of the row dim handles the remainder


def mve(x, alpha, *, max_row_tile=256, max_lane_tile=4096):
    """x: (B, C, H, W). alpha: (1, C, 1, 1) parameter.
    Returns alpha * spatial_mean(x), shape (B, C, 1, 1)."""
    B, C, H, W = x.shape
    HW = H * W
    rows = B * C

    # 2-D streaming view: rows on sublanes, flattened spatial on lanes.
    x2d = x.reshape(rows, HW)

    # Tile selection (padding-based; zero padding is exact since we divide by
    # the true HW at finalize).
    row_tile = _choose_row_tile(rows, max_row_tile)
    lane_tile = _choose_lane_tile(HW, max_lane_tile)
    rows_p = _round_up(rows, row_tile)
    hw_p = _round_up(HW, lane_tile)
    if rows_p != rows or hw_p != HW:
        x2d = jnp.pad(x2d, ((0, rows_p - rows), (0, hw_p - HW)))
    n_r = rows_p // row_tile
    n_s = hw_p // lane_tile

    # Per-row alpha (tiny O(B*C) broadcast done in plain JAX).
    alpha_row = jnp.broadcast_to(alpha.reshape(1, C), (B, C)).reshape(rows, 1)
    alpha_row = alpha_row.astype(jnp.float32)
    if rows_p != rows:
        alpha_row = jnp.pad(alpha_row, ((0, rows_p - rows), (0, 0)))

    kernel = functools.partial(_mve_kernel, inv_hw=float(1.0 / HW))

    itemsize = jnp.dtype(x.dtype).itemsize
    cost = pl.CostEstimate(
        flops=int(rows * HW + 2 * rows),  # adds for the sum + final scale
        transcendentals=0,
        bytes_accessed=int(rows * HW * itemsize + rows * 4 + rows * itemsize),
    )

    out2d = pl.pallas_call(
        kernel,
        out_shape=jax.ShapeDtypeStruct((rows_p, 1), x.dtype),
        grid_spec=pltpu.PrefetchScalarGridSpec(
            num_scalar_prefetch=0,
            grid=(n_r, n_s),
            in_specs=[
                pl.BlockSpec((row_tile, 1), lambda r, s: (r, 0)),          # alpha per row
                pl.BlockSpec((row_tile, lane_tile), lambda r, s: (r, s)),  # x tile
            ],
            out_specs=pl.BlockSpec((row_tile, 1), lambda r, s: (r, 0)),    # resident output
            scratch_shapes=[pltpu.VMEM((row_tile, 1), jnp.float32)],
        ),
        compiler_params=pltpu.CompilerParams(
            dimension_semantics=("parallel", "arbitrary"),
            vmem_limit_bytes=32 * 1024 * 1024,
        ),
        cost_estimate=cost,
    )(alpha_row, x2d)

    return out2d[:rows].reshape(B, C, 1, 1)


def ref_mve(x, alpha):
    B, C, H, W = x.shape
    mean = x.reshape(B, C, -1).mean(axis=2).reshape(B, C, 1, 1)
    return alpha * mean


if __name__ == "__main__":
    B, C, H, W = 2, 4, 16, 16

    key = jax.random.PRNGKey(0)
    kx, ka = jax.random.split(key, 2)

    x = jax.random.normal(kx, (B, C, H, W), dtype=jnp.float32)
    # Module init uses torch.full((1, C, 1, 1), alpha=1.0); use a non-trivial
    # deterministic value so the alpha scaling is actually exercised.
    alpha = 1.0 + 0.1 * jax.random.normal(ka, (1, C, 1, 1), dtype=jnp.float32)

    out = mve(x, alpha)
    out = jax.block_until_ready(out)

    ref = ref_mve(x, alpha)
    assert out.shape == (B, C, 1, 1)
    assert jnp.allclose(out, ref, rtol=1e-5, atol=1e-6), "mismatch vs reference"

    print("KERNEL_OK")
</pallas_src>

<mosaic_0001>
module attributes {stable_mosaic.version = 11 : i64} {
  func.func @_mve_kernel(%arg0: i32, %arg1: i32, %arg2: memref<8x1xf32, #tpu.memory_space<vmem>>, %arg3: memref<8x256xf32, #tpu.memory_space<vmem>>, %arg4: memref<8x1xf32, #tpu.memory_space<vmem>>, %arg5: memref<8x1xf32, #tpu.memory_space<vmem>>) attributes {dimension_semantics = [#tpu.dimension_semantics<parallel>, #tpu.dimension_semantics<arbitrary>], iteration_bounds = array<i64: 1, 1>, scalar_prefetch = 0 : i64, scratch_operands = 1 : i64, tpu.core_type = #tpu.core_type<tc>, window_params = [{transform_indices = @transform_0, window_bounds = array<i64: 8, 1>}, {transform_indices = @transform_1, window_bounds = array<i64: 8, 256>}, {transform_indices = @transform_2, window_bounds = array<i64: 8, 1>}]} {
    %c0_i32 = arith.constant 0 : i32
    %0 = arith.cmpi eq, %arg1, %c0_i32 : i32
    %1 = arith.extui %0 : i1 to i32
    %c0_i32_0 = arith.constant 0 : i32
    %2 = arith.cmpi ne, %1, %c0_i32_0 : i32
    scf.if %2 {
      %cst_8 = arith.constant 0.000000e+00 : f32
      %12 = vector.broadcast %cst_8 : f32 to vector<8x1xf32>
      %c0_9 = arith.constant 0 : index
      %c0_10 = arith.constant 0 : index
      %13 = vector.load %arg5[%c0_9, %c0_10] : memref<8x1xf32, #tpu.memory_space<vmem>>, vector<8x1xf32>
      tpu.vector_store %arg5[%c0_9, %c0_10], %12 {strides = array<i32>} : memref<8x1xf32, #tpu.memory_space<vmem>>, vector<8x1xf32>,
    } else {
    }
    %c0 = arith.constant 0 : index
    %c0_1 = arith.constant 0 : index
    %3 = vector.load %arg5[%c0, %c0_1] : memref<8x1xf32, #tpu.memory_space<vmem>>, vector<8x1xf32>
    %c0_2 = arith.constant 0 : index
    %c0_3 = arith.constant 0 : index
    %4 = vector.load %arg3[%c0_2, %c0_3] : memref<8x256xf32, #tpu.memory_space<vmem>>, vector<8x256xf32>
    %cst = arith.constant dense<0.000000e+00> : vector<8xf32>
    %5 = vector.multi_reduction <add>, %4, %cst [1] : vector<8x256xf32> to vector<8xf32>
    %6 = vector.shape_cast %5 : vector<8xf32> to vector<8x1xf32>
    %7 = arith.addf %3, %6 : vector<8x1xf32>
    %c0_4 = arith.constant 0 : index
    %c0_5 = arith.constant 0 : index
    %8 = vector.load %arg5[%c0_4, %c0_5] : memref<8x1xf32, #tpu.memory_space<vmem>>, vector<8x1xf32>
    tpu.vector_store %arg5[%c0_4, %c0_5], %7 {strides = array<i32>} : memref<8x1xf32, #tpu.memory_space<vmem>>, vector<8x1xf32>,
    %c0_i32_6 = arith.constant 0 : i32
    %9 = arith.cmpi eq, %arg1, %c0_i32_6 : i32
    %10 = arith.extui %9 : i1 to i32
    %c0_i32_7 = arith.constant 0 : i32
    %11 = arith.cmpi ne, %10, %c0_i32_7 : i32
    scf.if %11 {
      %c0_8 = arith.constant 0 : index
      %c0_9 = arith.constant 0 : index
      %12 = vector.load %arg2[%c0_8, %c0_9] : memref<8x1xf32, #tpu.memory_space<vmem>>, vector<8x1xf32>
      %c0_10 = arith.constant 0 : index
      %c0_11 = arith.constant 0 : index
      %13 = vector.load %arg5[%c0_10, %c0_11] : memref<8x1xf32, #tpu.memory_space<vmem>>, vector<8x1xf32>
      %14 = arith.mulf %12, %13 : vector<8x1xf32>
      %cst_12 = arith.constant 3.906250e-03 : f32
      %15 = vector.broadcast %cst_12 : f32 to vector<8x1xf32>
      %16 = arith.mulf %14, %15 : vector<8x1xf32>
      %c0_13 = arith.constant 0 : index
      %c0_14 = arith.constant 0 : index
      %17 = vector.load %arg4[%c0_13, %c0_14] : memref<8x1xf32, #tpu.memory_space<vmem>>, vector<8x1xf32>
      tpu.vector_store %arg4[%c0_13, %c0_14], %16 {strides = array<i32>} : memref<8x1xf32, #tpu.memory_space<vmem>>, vector<8x1xf32>,
    } else {
    }
    return
  }
  func.func @transform_0(%arg0: i32, %arg1: i32) -> (i32, i32) {
    %c0_i32 = arith.constant 0 : i32
    %c0_i32_0 = arith.constant 0 : i32
    return %arg0, %c0_i32 : i32, i32
  }
  func.func @transform_1(%arg0: i32, %arg1: i32) -> (i32, i32) {
    %c0_i32 = arith.constant 0 : i32
    return %arg0, %arg1 : i32, i32
  }
  func.func @transform_2(%arg0: i32, %arg1: i32) -> (i32, i32) {
    %c0_i32 = arith.constant 0 : i32
    %c0_i32_0 = arith.constant 0 : i32
    return %arg0, %c0_i32 : i32, i32
  }
}

</mosaic_0001>

<bundles_post_ra>
// kernel: tpu_custom_call.1
= control target key start
LH: loop header
LB: loop body
LE: loop exit
PB: predicated region body
PF: predicated region fallthrough
CT: control target
= control target key end

     0   :  { %7 = vsyncpa [#allocation4], 0  ;;  %s81_s12 = smov [#allocation3]   ;;  %s107_s0 = inlined_call_operand.vmem [shape: f32[8,1], index: 0, kind: input, shape index: {}]   ;;  %s108_s1 = inlined_call_operand.hbm [shape: f32[8,256], index: 1, kind: input, shape index: {}]   ;;  %s109_s2 = inlined_call_operand.vmem [shape: f32[8,1], index: 2, kind: output, shape index: {}]  }
   0x1   :  { %s15_s11 = sshll.u32 %s108_s1, 4  ;;  %s17_s13 = sshll.u32 %s81_s12, 4  ;;  %s16_s11 = int_to_ptr.hbm [resolvable:$true] %s15_s11  ;;  %s18_s13 = int_to_ptr.vmem [resolvable:$true] %s17_s13 }
   0x2   :  { %20 = dma.hbm_to_vmem [thread:$0]  %s16_s11, 256, %s18_s13, [#allocation4]  }
   0x3   :  { %79 = dma.done.wait [#allocation4], 256  }
   0x4   :  { %80 = vsyncadd [#allocation4], 4294967040  ;;  %vm29_vm0 = vcmask 7168   ;;  %v82_v0 = vmov 0.0   ;;  %v32_v1 = vld [vmem:[#allocation3] sm:$0xff]  ;;  %v33_v2 = vld [vmem:[#allocation3 + $0x8] sm:$0xff] }
   0x5   :  { %30 = vst.msk [vmem:[#allocation2] sm:$0xff] %vm29_vm0, %v82_v0  ;;  %v34_v3 = vadd.f32 %v33_v2, %v32_v1  ;;  %v43_v7 = vld [vmem:[%s107_s0] sm:$0xff] }
   0x7   :  { %35 = vadd.xlane.f32.xlu0 %v34_v3 }
   0xc   :  { %v31_v4 = vld [vmem:[#allocation2] sm:$0xff] }
  0x7a   :  { %v36_v5 = vpop.xlane.xlu0 %35 }
  0x7b   :  { %v37_v6 = vadd.f32 %v36_v5, %v31_v4 }
  0x7d   :  { %39 = vst.msk [vmem:[#allocation2] sm:$0xff] %vm29_vm0, %v37_v6 }
  0x84   :  { %v44_v8 = vld [vmem:[#allocation2] sm:$0xff] }
  0x85   :  { %v45_v9 = vmul.f32 %v44_v8, %v43_v7 }
  0x87   :  { %v46_v10 = vmul.f32 0.00390625, %v45_v9 }
  0x89   :  { %47 = vst.msk [vmem:[%s109_s2] sm:$0xff] %vm29_vm0, %v46_v10 }
  0x8a   :  { %52 = vsyncpa [#allocation4], 1 }

</bundles_post_ra>
